<compile_context>
chip_gen: v5e
topology: v5e:2x2
jax: 0.10.0
libtpu: 0.0.40
codegen_flags: <defaults>
</compile_context>

<pallas_src>
import functools

import jax
import jax.numpy as jnp
from jax.experimental import pallas as pl
from jax.experimental.pallas import tpu as pltpu


_VMEM_LIMIT_BYTES = 32 * 1024 * 1024  # safe across v5e/v6e/v7x scoped budgets
_TARGET_BLOCK_BYTES = 2 * 1024 * 1024  # per x tile (before double-buffering)


# ---------------------------------------------------------------------------
# Pass 1: pooled sum + max over the spatial (HW) axis.
# ---------------------------------------------------------------------------
def _pool_kernel(x_ref, sum_ref, max_ref, *, hw_total, hw_tile, needs_mask):
    hw = pl.program_id(1)

    x = x_ref[...].astype(jnp.float32)                 # (1, C, HW_TILE)

    if needs_mask:
        # Last tile may contain zero-padding: zeros are harmless for the sum,
        # but must be excluded from the max.
        lane = jax.lax.broadcasted_iota(jnp.int32, x.shape, 2)
        valid = (hw * hw_tile + lane) < hw_total
        x_for_max = jnp.where(valid, x, -jnp.inf)
    else:
        x_for_max = x

    part_sum = jnp.sum(x, axis=-1)[:, None, :]         # (1, 1, C)
    part_max = jnp.max(x_for_max, axis=-1)[:, None, :]  # (1, 1, C)

    @pl.when(hw == 0)
    def _():
        sum_ref[...] = part_sum
        max_ref[...] = part_max

    @pl.when(hw != 0)
    def _():
        sum_ref[...] = sum_ref[...] + part_sum
        max_ref[...] = jnp.maximum(max_ref[...], part_max)


# ---------------------------------------------------------------------------
# Pass 2: broadcast-multiply by the per-channel gate.
# ---------------------------------------------------------------------------
def _scale_kernel(x_ref, s_ref, y_ref):
    x = x_ref[...].astype(jnp.float32)                 # (1, C, HW_TILE)
    s = s_ref[...]                                     # (1, C, 1) f32
    y_ref[...] = (x * s).astype(y_ref.dtype)


def _choose_hw_tile(hw, c, itemsize):
    """Lane-dense HW tile (multiple of 128) with ~2 MiB per x block."""
    hw_rounded = pl.cdiv(hw, 128) * 128
    max_by_vmem = max(128, (_TARGET_BLOCK_BYTES // max(1, c * itemsize)) // 128 * 128)
    return int(min(hw_rounded, max_by_vmem, 4096))


def channel_attention(x_nchw, w1, b1, w2, b2):
    """x_nchw: (B, C, H, W); weights stored (in, out) so y = x @ W + b."""
    B, C, H, W = x_nchw.shape
    HW = H * W
    x3 = x_nchw.reshape(B, C, HW)                      # keep input dtype
    itemsize = x3.dtype.itemsize

    hw_tile = _choose_hw_tile(HW, C, itemsize)
    n_hw = pl.cdiv(HW, hw_tile)
    hw_pad = n_hw * hw_tile
    needs_mask = hw_pad != HW

    x3p = jnp.pad(x3, ((0, 0), (0, 0), (0, hw_pad - HW))) if needs_mask else x3

    # ---------------- Pass 1: pooling (reduction over HW) ----------------
    pool_kernel = functools.partial(
        _pool_kernel, hw_total=HW, hw_tile=hw_tile, needs_mask=needs_mask)

    pooled_sum, pooled_max = pl.pallas_call(
        pool_kernel,
        out_shape=(jax.ShapeDtypeStruct((B, 1, C), jnp.float32),
                   jax.ShapeDtypeStruct((B, 1, C), jnp.float32)),
        grid=(B, n_hw),
        in_specs=[pl.BlockSpec((1, C, hw_tile), lambda b, hw: (b, 0, hw))],
        out_specs=(pl.BlockSpec((1, 1, C), lambda b, hw: (b, 0, 0)),
                   pl.BlockSpec((1, 1, C), lambda b, hw: (b, 0, 0))),
        compiler_params=pltpu.CompilerParams(
            dimension_semantics=("parallel", "arbitrary"),
            vmem_limit_bytes=_VMEM_LIMIT_BYTES),
        cost_estimate=pl.CostEstimate(
            flops=2 * B * C * hw_pad,
            transcendentals=0,
            bytes_accessed=B * C * hw_pad * itemsize + 2 * B * C * 4),
    )(x3p)

    # ---------------- Tiny MLP + sigmoid gate (plain JAX, f32) ----------------
    avg_pool = pooled_sum.reshape(B, C) / HW
    max_pool = pooled_max.reshape(B, C)

    w1f = w1.astype(jnp.float32)
    b1f = b1.reshape(1, -1).astype(jnp.float32)
    w2f = w2.astype(jnp.float32)
    b2f = b2.reshape(1, -1).astype(jnp.float32)

    def mlp(p):
        h = jnp.maximum(p @ w1f + b1f, 0.0)
        return h @ w2f + b2f

    scale = jax.nn.sigmoid(mlp(avg_pool) + mlp(max_pool))        # (B, C) f32
    scale3 = scale.reshape(B, C, 1)

    # ---------------- Pass 2: streaming broadcast multiply ----------------
    y3p = pl.pallas_call(
        _scale_kernel,
        out_shape=jax.ShapeDtypeStruct((B, C, hw_pad), x3.dtype),
        grid=(B, n_hw),
        in_specs=[pl.BlockSpec((1, C, hw_tile), lambda b, hw: (b, 0, hw)),
                  pl.BlockSpec((1, C, 1), lambda b, hw: (b, 0, 0))],
        out_specs=pl.BlockSpec((1, C, hw_tile), lambda b, hw: (b, 0, hw)),
        compiler_params=pltpu.CompilerParams(
            dimension_semantics=("parallel", "parallel"),
            vmem_limit_bytes=_VMEM_LIMIT_BYTES),
        cost_estimate=pl.CostEstimate(
            flops=B * C * hw_pad,
            transcendentals=0,
            bytes_accessed=2 * B * C * hw_pad * itemsize + B * C * 4),
    )(x3p, scale3)

    y3 = y3p[:, :, :HW] if needs_mask else y3p
    return y3.reshape(B, C, H, W)


def reference(x_nchw, w1, b1, w2, b2):
    B, C, H, W = x_nchw.shape
    xf = x_nchw.reshape(B, C, -1).astype(jnp.float32)
    avg_p = jnp.mean(xf, axis=-1)
    max_p = jnp.max(xf, axis=-1)

    def mlp(p):
        h = jnp.maximum(p @ w1 + b1, 0.0)
        return h @ w2 + b2

    scale = jax.nn.sigmoid(mlp(avg_p) + mlp(max_p))
    return x_nchw * scale[:, :, None, None].astype(x_nchw.dtype)


if __name__ == "__main__":
    # Small shapes consistent with the module: channels divisible by
    # reduction_ratio=8.
    B, C, H, W = 2, 16, 16, 16
    reduction_ratio = 8
    Cr = C // reduction_ratio

    key = jax.random.PRNGKey(0)
    kx, k1, k2, k3, k4 = jax.random.split(key, 5)

    x = jax.random.normal(kx, (B, C, H, W), dtype=jnp.float32)

    # PyTorch-style Linear init: U(-1/sqrt(fan_in), 1/sqrt(fan_in)), stored (in, out).
    bound1 = 1.0 / jnp.sqrt(C)
    bound2 = 1.0 / jnp.sqrt(Cr)
    w1 = jax.random.uniform(k1, (C, Cr), minval=-bound1, maxval=bound1, dtype=jnp.float32)
    b1 = jax.random.uniform(k2, (Cr,), minval=-bound1, maxval=bound1, dtype=jnp.float32)
    w2 = jax.random.uniform(k3, (Cr, C), minval=-bound2, maxval=bound2, dtype=jnp.float32)
    b2 = jax.random.uniform(k4, (C,), minval=-bound2, maxval=bound2, dtype=jnp.float32)

    out = channel_attention(x, w1, b1, w2, b2)
    out = jax.block_until_ready(out)

    ref = reference(x, w1, b1, w2, b2)
    assert out.shape == (B, C, H, W)
    assert jnp.max(jnp.abs(out - ref)) < 1e-5

    print("KERNEL_OK")
</pallas_src>

<mosaic_0001>
module attributes {stable_mosaic.version = 11 : i64} {
  func.func @_pool_kernel(%arg0: i32, %arg1: i32, %arg2: memref<1x16x256xf32, #tpu.memory_space<vmem>>, %arg3: memref<1x1x16xf32, #tpu.memory_space<vmem>>, %arg4: memref<1x1x16xf32, #tpu.memory_space<vmem>>) attributes {dimension_semantics = [#tpu.dimension_semantics<parallel>, #tpu.dimension_semantics<arbitrary>], iteration_bounds = array<i64: 2, 1>, scalar_prefetch = 0 : i64, scratch_operands = 0 : i64, tpu.core_type = #tpu.core_type<tc>, window_params = [{transform_indices = @transform_0, window_bounds = array<i64: 1, 16, 256>}, {transform_indices = @transform_1, window_bounds = array<i64: 1, 1, 16>}, {transform_indices = @transform_2, window_bounds = array<i64: 1, 1, 16>}]} {
    %c0 = arith.constant 0 : index
    %c0_0 = arith.constant 0 : index
    %c0_1 = arith.constant 0 : index
    %0 = vector.load %arg2[%c0, %c0_0, %c0_1] : memref<1x16x256xf32, #tpu.memory_space<vmem>>, vector<1x16x256xf32>
    %cst = arith.constant dense<0.000000e+00> : vector<1x16xf32>
    %1 = vector.multi_reduction <add>, %0, %cst [2] : vector<1x16x256xf32> to vector<1x16xf32>
    %2 = vector.shape_cast %1 : vector<1x16xf32> to vector<1x1x16xf32>
    %cst_2 = arith.constant dense<0xFF800000> : vector<1x16xf32>
    %3 = vector.multi_reduction <maximumf>, %0, %cst_2 [2] : vector<1x16x256xf32> to vector<1x16xf32>
    %4 = vector.shape_cast %3 : vector<1x16xf32> to vector<1x1x16xf32>
    %c0_i32 = arith.constant 0 : i32
    %5 = arith.cmpi eq, %arg1, %c0_i32 : i32
    %6 = arith.extui %5 : i1 to i32
    %c0_i32_3 = arith.constant 0 : i32
    %7 = arith.cmpi ne, %6, %c0_i32_3 : i32
    scf.if %7 {
      %c0_6 = arith.constant 0 : index
      %c0_7 = arith.constant 0 : index
      %c0_8 = arith.constant 0 : index
      %11 = vector.load %arg3[%c0_6, %c0_7, %c0_8] : memref<1x1x16xf32, #tpu.memory_space<vmem>>, vector<1x1x16xf32>
      tpu.vector_store %arg3[%c0_6, %c0_7, %c0_8], %2 {strides = array<i32>} : memref<1x1x16xf32, #tpu.memory_space<vmem>>, vector<1x1x16xf32>,
      %c0_9 = arith.constant 0 : index
      %c0_10 = arith.constant 0 : index
      %c0_11 = arith.constant 0 : index
      %12 = vector.load %arg4[%c0_9, %c0_10, %c0_11] : memref<1x1x16xf32, #tpu.memory_space<vmem>>, vector<1x1x16xf32>
      tpu.vector_store %arg4[%c0_9, %c0_10, %c0_11], %4 {strides = array<i32>} : memref<1x1x16xf32, #tpu.memory_space<vmem>>, vector<1x1x16xf32>,
    } else {
    }
    %c0_i32_4 = arith.constant 0 : i32
    %8 = arith.cmpi ne, %arg1, %c0_i32_4 : i32
    %9 = arith.extui %8 : i1 to i32
    %c0_i32_5 = arith.constant 0 : i32
    %10 = arith.cmpi ne, %9, %c0_i32_5 : i32
    scf.if %10 {
      %c0_6 = arith.constant 0 : index
      %c0_7 = arith.constant 0 : index
      %c0_8 = arith.constant 0 : index
      %11 = vector.load %arg3[%c0_6, %c0_7, %c0_8] : memref<1x1x16xf32, #tpu.memory_space<vmem>>, vector<1x1x16xf32>
      %12 = arith.addf %11, %2 : vector<1x1x16xf32>
      %c0_9 = arith.constant 0 : index
      %c0_10 = arith.constant 0 : index
      %c0_11 = arith.constant 0 : index
      %13 = vector.load %arg3[%c0_9, %c0_10, %c0_11] : memref<1x1x16xf32, #tpu.memory_space<vmem>>, vector<1x1x16xf32>
      tpu.vector_store %arg3[%c0_9, %c0_10, %c0_11], %12 {strides = array<i32>} : memref<1x1x16xf32, #tpu.memory_space<vmem>>, vector<1x1x16xf32>,
      %c0_12 = arith.constant 0 : index
      %c0_13 = arith.constant 0 : index
      %c0_14 = arith.constant 0 : index
      %14 = vector.load %arg4[%c0_12, %c0_13, %c0_14] : memref<1x1x16xf32, #tpu.memory_space<vmem>>, vector<1x1x16xf32>
      %15 = arith.maximumf %14, %4 : vector<1x1x16xf32>
      %c0_15 = arith.constant 0 : index
      %c0_16 = arith.constant 0 : index
      %c0_17 = arith.constant 0 : index
      %16 = vector.load %arg4[%c0_15, %c0_16, %c0_17] : memref<1x1x16xf32, #tpu.memory_space<vmem>>, vector<1x1x16xf32>
      tpu.vector_store %arg4[%c0_15, %c0_16, %c0_17], %15 {strides = array<i32>} : memref<1x1x16xf32, #tpu.memory_space<vmem>>, vector<1x1x16xf32>,
    } else {
    }
    return
  }
  func.func @transform_0(%arg0: i32, %arg1: i32) -> (i32, i32, i32) {
    %c0_i32 = arith.constant 0 : i32
    %c0_i32_0 = arith.constant 0 : i32
    return %arg0, %c0_i32, %arg1 : i32, i32, i32
  }
  func.func @transform_1(%arg0: i32, %arg1: i32) -> (i32, i32, i32) {
    %c0_i32 = arith.constant 0 : i32
    %c0_i32_0 = arith.constant 0 : i32
    %c0_i32_1 = arith.constant 0 : i32
    return %arg0, %c0_i32, %c0_i32_0 : i32, i32, i32
  }
  func.func @transform_2(%arg0: i32, %arg1: i32) -> (i32, i32, i32) {
    %c0_i32 = arith.constant 0 : i32
    %c0_i32_0 = arith.constant 0 : i32
    %c0_i32_1 = arith.constant 0 : i32
    return %arg0, %c0_i32, %c0_i32_0 : i32, i32, i32
  }
}

</mosaic_0001>

<bundles_post_ra>
// kernel: tpu_custom_call.1
= control target key start
LH: loop header
LB: loop body
LE: loop exit
PB: predicated region body
PF: predicated region fallthrough
CT: control target
= control target key end

     0   :  { %8 = vsyncpa [#allocation3], 0  ;;  %s890_s0 = inlined_call_operand.hbm [shape: f32[2,16,256], index: 0, kind: input, shape index: {}]   ;;  %s891_s1 = inlined_call_operand.hbm [shape: f32[2,1,16], index: 1, kind: output, shape index: {0}]   ;;  %s892_s2 = inlined_call_operand.hbm [shape: f32[2,1,16], index: 2, kind: output, shape index: {1}]  }
   0x1   :  { %10 = vsyncpa [#allocation3 + $0x1], 0 }
   0x2   :  { %11 = vsyncpa [#allocation4], 0 }
   0x3   :  { %13 = vsyncpa [#allocation4 + $0x1], 0 }
   0x4   :  { %14 = vsyncpa [#allocation7], 0 }
   0x5   :  { %16 = vsyncpa [#allocation7 + $0x1], 0  ;;  %s729_s9 = smov 0   ;;  %s731_s10 = smov 0  }
   0x6   :  { %s733_s11 = smov 0   ;;  %s735_s12 = smov 0  }
   0x7   :  { %s737_s13 = smov 0   ;;  %s739_s14 = smov 0  }
   0x8 LB: > { %s485_s15 = sadd.s32 4294967295, %s710_s14   ;;  %s486_s16 = sadd.s32 4294967294, %s710_s14   ;;  %s710_s14 = sphi %s739_s14, %s22_s14   ;;  %s706_s13 = sphi %s737_s13, %s901_s13   ;;  %s702_s12 = sphi %s735_s12, %s900_s12   ;;  %s698_s11 = sphi %s733_s11, %s899_s11   ;;  %s694_s10 = sphi %s731_s10, %s898_s10   ;;  %s690_s9 = sphi %s729_s9, %s897_s9  }
   0x9   : > { %s34_s17 = sadd.s32 1, %s706_s13  ;;  %s43_s18 = sadd.s32 1, %s698_s11 }
   0xa   : > { %p36_p0 = scmp.ge.s32.totalorder %s34_s17, 2  ;;  %p50_p1 = scmp.ne.s32.totalorder %s698_s11, %s694_s10 }
   0xb   : > { %p51_p2 = scmp.eq.s32.totalorder %s710_s14, 0  ;;  %p56_p3 = scmp.ne.s32.totalorder %s694_s10, %s690_s9 }
   0xc   : > { %s903_s17 = smov (%p36_p0, %s34_s17), 0  ;;  %p57_p5 = scmp.eq.s32.totalorder %s485_s15, 0 }
   0xd   : > { %p770_p4 = por %p51_p2, %p50_p1  ;;  %s38_s20 = ssub.s32 %s706_s13, %s903_s17 }
   0xe   : > { %p80_p6 = scmp.eq.s32.totalorder %s485_s15, 1  ;;  %p41_p7 = scmp.eq.s32.totalorder %s38_s20, 0 }
   0xf   : > { %p776_p8 = por %p57_p5, %p56_p3  ;;  %p86_p10 = scmp.eq.s32.totalorder %s486_s16, 1 }
  0x10   : > { %p780_p9 = por %p80_p6, %p50_p1  ;;  %p488_p12 = scmp.ge.s32.totalorder %s710_s14, 2 }
  0x11   : > { %s785_s23 = scalar_select %p41_p7, %s698_s11, %s43_s18  }
  0x12   : > { %p787_p11 = por %p86_p10, %p56_p3  ;;  %p514_p13 = scmp.lt.s32.totalorder %s710_s14, 2 }
  0x13   : > { %s132_s25 = sand.u32 1, %s698_s11   ;;  %s496_s27 = sshll.u32 %s706_s13, 5 }
  0x14   : > { %s489_s26 = sshll.u32 %s132_s25, 5  ;;  %s143_s30 = scalar_lea.hbm %s890_s0, %s496_s27 }
  0x15   : > { %s136_s3 = scalar_lea.vmem [#allocation2], %s489_s26  ;;  %s144_s5 = sshll.u32 %s143_s30, 4  ;;  %s145_s5 = int_to_ptr.hbm [resolvable:$true] %s144_s5 }
  0x16   : > { %s146_s4 = sshll.u32 %s136_s3, 4  ;;  %p504_p0 = pnand %p514_p13, %p770_p4  ;;  %s147_s4 = int_to_ptr.vmem [resolvable:$true] %s146_s4 }
  0x17   : > { %p492_p1 = scmp.ge.s32.totalorder %s710_s14, 1  ;;  %s133_s6 = scalar_lea.sflag [#allocation3], %s132_s25 }
  0x18   : > { %s712_s7 = smov 256   ;;  %s713_s8 = smov 16  }
  0x19   : > { %506 = dma.hbm_to_vmem [thread:$0]  (!%p504_p0), %s145_s5, 512, %s147_s4, %s133_s6, %s712_s7, %s712_s7, %s713_s8  }
  0x1a   : > { %p154_p2 = scmp.lt.s32.totalorder %s710_s14, 3 }
  0x1c   : > { %p155_p3 = pnand %p492_p1, %p154_p2 }
  0x1d   : > { %s803_s15 = sand.u32 (!%p155_p3), 1, %s694_s10  }
  0x1e   : > { %158 = sbr.rel (%p155_p3) target bundleno = 181 (0xb5), region = 24  ;;  %s493_s16 = sshll.u32 (!%p155_p3), %s803_s15, 5 }
  0x1f   : > { %s161_s18 = scalar_lea.sflag (!%p155_p3), [#allocation3], %s803_s15  ;;  %s164_s20 = scalar_lea.vmem (!%p155_p3), [#allocation2], %s493_s16 }
  0x23   : > { %677 = dma.done.wait (%p776_p8), %s161_s18, 512  }
  0x24   : > { %679 = vsyncadd (%p776_p8), %s161_s18, 4294966784  ;;  %v190_v0 = vld [vmem:[%s164_s20] sm:$0xff]  ;;  %v191_v1 = vld [vmem:[%s164_s20 + $0x8] sm:$0xff]  ;;  %v212_v8 = vlaneseq  ;;  %s363_s25 = scalar_lea.hbm %s891_s1, %s702_s12  ;;  %s376_s28 = scalar_lea.hbm %s892_s2, %s702_s12  ;;  %vm217_vm0 = vcmask 130112   ;;  %vm220_vm1 = vcmask 122880  }
  0x25   : > { %v200_v2 = vmax.f32 %v190_v0, %v191_v1  ;;  %v194_v3 = vadd.f32 %v191_v1, %v190_v0  ;;  %v192_v4 = vld [vmem:[%s164_s20 + $0x10] sm:$0xff]  ;;  %v193_v5 = vld [vmem:[%s164_s20 + $0x18] sm:$0xff]  ;;  %s182_s29 = scalar_lea.vmem [#allocation5], %s803_s15  ;;  %s822_s3 = sshll.u32 %s363_s25, 4  ;;  %s368_s3 = int_to_ptr.hbm [resolvable:$true] %s822_s3 }
  0x26   : > { %v203_v6 = vmax.f32 %v192_v4, %v193_v5  ;;  %v197_v7 = vadd.f32 %v193_v5, %v192_v4  ;;  %v213_v11 = vand.u32 127, %v212_v8  ;;  %s820_s30 = sshll.u32 %s182_s29, 4  ;;  %s188_s4 = scalar_lea.vmem [#allocation6], %s803_s15  ;;  %s366_s30 = int_to_ptr.vmem [resolvable:$true] %s820_s30 }
  0x27   : > { %201 = vmax.xlane.f32.xlu1 %v200_v2  ;;  %195 = vadd.xlane.f32.xlu0 %v194_v3  ;;  %s827_s5 = sshll.u32 %s188_s4, 4  ;;  %s829_s6 = sshll.u32 %s376_s28, 4  ;;  %s379_s5 = int_to_ptr.vmem [resolvable:$true] %s827_s5  ;;  %s381_s6 = int_to_ptr.hbm [resolvable:$true] %s829_s6 }
  0x28   : > { %v215_v12 = vadd.s32 4294967288, %v213_v11  ;;  %s351_s12 = scalar_lea.sflag [#allocation4], %s803_s15  ;;  %s610_s7 = sshra.s32 %s368_s3, 4  ;;  %s611_s7 = int_to_ptr.hbm [resolvable:$true] %s610_s7 }
  0x29   : > { %s612_s8 = scalar_lea.hbm %s611_s7, 1  ;;  %s616_s20 = scalar_lea.hbm %s891_s1, 2 }
  0x2a   : > { %p613_p4 = scmp.ne.s32.totalorder %s611_s7, %s612_s8  ;;  %p617_p7 = scmp.lt.s32.totalorder %s611_s7, %s891_s1 }
  0x2b   : > { %p618_p8 = scmp.lt.s32.totalorder %s616_s20, %s612_s8 }
  0x2c   : > { %p614_p5 = pnand %p613_p4, %p780_p9 }
  0x2d   : > { %p619_p10 = por %p618_p8, %p617_p7 }
  0x2e   : > { %p615_p6 = pneg %p614_p5 }
  0x2f   : > { %204 = vmax.xlane.f32.xlu1 %v203_v6  ;;  %198 = vadd.xlane.f32.xlu0 %v197_v7 }
  0x30   : > { %p620_p13 = pnand %p619_p10, %p615_p6 }
  0x9a   : > { %v202_v9 = vpop.xlane.xlu1 %201  ;;  %v196_v10 = vpop.xlane.xlu0 %195 }
  0x9b   : > { %v224_v15 = vperm.slane %v202_v9, %v213_v11  ;;  %v214_v16 = vperm.slane %v196_v10, %v213_v11 }
  0xa2   : > { %v205_v13 = vpop.xlane.xlu1 %204  ;;  %v199_v14 = vpop.xlane.xlu0 %198 }
  0xa3   : > { %v225_v17 = vperm.slane %v205_v13, %v215_v12  ;;  %v216_v18 = vperm.slane %v199_v14, %v215_v12 }
  0xa5   : > { %v226_v19 = vsel %vm217_vm0, %v225_v17, %v224_v15  ;;  %v218_v20 = vsel %vm217_vm0, %v216_v18, %v214_v16 }
  0xa6   : > { %221 = vst.msk [vmem:[%s182_s29] sm:$0x1] %vm220_vm1, %v218_v20 }
  0xa7   : > { %623 = shalt.err (!%p620_p13)
}
  0xa8   : > { %499 = dma.vmem_to_hbm [thread:$0]  (%p780_p9), %s366_s30, 16, %s368_s3, %s351_s12   ;;  %228 = vst.msk [vmem:[%s188_s4] sm:$0x1] %vm220_vm1, %v226_v19 }
  0xa9   : > { %s355_s25 = scalar_lea.sflag [#allocation7], %s803_s15  ;;  %s638_s26 = sshra.s32 %s381_s6, 4  ;;  %s639_s26 = int_to_ptr.hbm [resolvable:$true] %s638_s26 }
  0xaa   : > { %s640_s27 = scalar_lea.hbm %s639_s26, 1  ;;  %s644_s7 = scalar_lea.hbm %s892_s2, 2 }
  0xab   : > { %p641_p0 = scmp.ne.s32.totalorder %s639_s26, %s640_s27  ;;  %p645_p3 = scmp.lt.s32.totalorder %s639_s26, %s892_s2 }
  0xac   : > { %p646_p4 = scmp.lt.s32.totalorder %s644_s7, %s640_s27 }
  0xad   : > { %p642_p1 = pnand %p641_p0, %p780_p9 }
  0xae   : > { %p647_p5 = por %p646_p4, %p645_p3 }
  0xaf   : > { %p643_p2 = pneg %p642_p1 }
  0xb1   : > { %p648_p6 = pnand %p647_p5, %p643_p2 }
  0xb3   : > { %651 = shalt.err (!%p648_p6)
}
  0xb4   : > { %500 = dma.vmem_to_hbm [thread:$0]  (%p780_p9), %s379_s5, 16, %s381_s6, %s355_s25  }
  0xb5 PF: > { %s392_s15 = sand.u32 1, %s690_s9   ;;  %p508_p7 = pnand %p488_p12, %p787_p11 }
  0xb6   : > { %s393_s30 = scalar_lea.sflag [#allocation4], %s392_s15 }
  0xb7   : > { %p509_p8 = pneg %p508_p7 }
  0xb9   : > { %681 = dma.done.wait (%p509_p8), %s393_s30, 16  }
  0xba   : > { %683 = vsyncadd (%p509_p8), %s393_s30, 4294967280  ;;  %s402_s3 = scalar_lea.sflag [#allocation7], %s392_s15 }
  0xbb   : > { %685 = dma.done.wait (%p509_p8), %s402_s3, 16  }
  0xbc   : > { %687 = vsyncadd (%p509_p8), %s402_s3, 4294967280  ;;  %s22_s14 = sadd.s32 1, %s710_s14   ;;  %s897_s9 = smov %s694_s10 }
  0xbd   : > { %p19_p10 = scmp.ge.s32.totalorder %s22_s14, 4   ;;  %s898_s10 = smov %s698_s11 }
  0xbe   : > { %s899_s11 = smov %s785_s23  ;;  %s900_s12 = smov %s706_s13 }
  0xbf   : > { %s901_s13 = smov %s903_s17  ;;  %21 = sbr.rel (!%p19_p10) target bundleno = 8 (0x8), region = 108 }
  0xc4   :  { %407 = vsyncpa [#allocation3], 1 }
  0xc5   :  { %409 = vsyncpa [#allocation3 + $0x1], 1 }
  0xc6   :  { %410 = vsyncpa [#allocation4], 1 }
  0xc7   :  { %412 = vsyncpa [#allocation4 + $0x1], 1 }
  0xc8   :  { %413 = vsyncpa [#allocation7], 1 }
  0xc9   :  { %415 = vsyncpa [#allocation7 + $0x1], 1 }

</bundles_post_ra>
